<compile_context>
chip_gen: v7x
topology: tpu7x:2x2x1
jax: 0.10.0
libtpu: 0.0.40
codegen_flags: <defaults>
</compile_context>

<pallas_src>
import jax
import jax.numpy as jnp
from jax.experimental import pallas as pl
from jax.experimental.pallas import tpu as pltpu

_LANE = 128


# --------------------------------------------------------------------------- kernels
def _bias_kernel(scale_ref, ctx_ref, wht_ref, b_ref, bias_ref):
    # scale_ref: (1,) f32 in SMEM        (adaptive_bias_scale)
    # ctx_ref  : (B, C)                  context
    # wht_ref  : (C, dim_out)            hyper-bias weight, pre-transposed
    # b_ref    : (1, dim_out)            main Linear bias
    # bias_ref : (B, dim_out) f32        fused output bias
    ctx = ctx_ref[...].astype(jnp.float32)
    # F.layer_norm over last dim, eps=1e-5, no affine params.
    mean = jnp.mean(ctx, axis=-1, keepdims=True)
    cen = ctx - mean
    var = jnp.mean(cen * cen, axis=-1, keepdims=True)
    ctx_ln = cen * jax.lax.rsqrt(var + 1e-5)
    # ctx@Wh + s*(LN(ctx)@Wh)  ==  (ctx + s*LN(ctx)) @ Wh  -> single MXU matmul.
    combined = (ctx + scale_ref[0] * ctx_ln).astype(wht_ref.dtype)
    hb = jnp.dot(combined, wht_ref[...], preferred_element_type=jnp.float32)
    bias_ref[...] = hb + b_ref[...].astype(jnp.float32)


def _mm_bias_2d_kernel(x_ref, wt_ref, bias_ref, out_ref):
    # 2-D x path: x (tm, K), wt (K, tn), bias (tm, tn) row-aligned, out (tm, tn).
    y = jnp.dot(x_ref[...], wt_ref[...], preferred_element_type=jnp.float32)
    out_ref[...] = (y + bias_ref[...]).astype(out_ref.dtype)


def _mm_bias_pack_kernel(x_ref, wt_ref, bias_ref, out_ref):
    # Small-T 3-D path, several batches packed into one M tile.
    # x (tb, T, K) -> (tb*T, K) matmul; bias (tb, 1, tn) broadcast over T in VMEM.
    tb, t, k = x_ref.shape
    tn = wt_ref.shape[-1]
    xm = x_ref[...].reshape(tb * t, k)
    y = jnp.dot(xm, wt_ref[...], preferred_element_type=jnp.float32)
    y = y.reshape(tb, t, tn) + bias_ref[...]
    out_ref[...] = y.astype(out_ref.dtype)


def _mm_bias_seq_kernel(x_ref, wt_ref, bias_ref, out_ref):
    # Large-T 3-D path, full K in one tile (no accumulator / no W re-stream per k).
    # x (1, tm, K), wt (K, tn), bias (1, 1, tn), out (1, tm, tn).
    y = jnp.dot(x_ref[0], wt_ref[...], preferred_element_type=jnp.float32)
    out_ref[0] = (y + bias_ref[0]).astype(out_ref.dtype)


def _mm_bias_seq_kacc_kernel(x_ref, wt_ref, bias_ref, out_ref, acc_ref):
    # K-tiled fallback (truly huge dim_in only); grid = (Nt, B, Tt, Kt), K innermost.
    k = pl.program_id(3)

    @pl.when(k == 0)
    def _():
        acc_ref[...] = jnp.zeros_like(acc_ref)

    acc_ref[...] += jnp.dot(x_ref[0], wt_ref[...],
                            preferred_element_type=jnp.float32)

    @pl.when(k == pl.num_programs(3) - 1)
    def _():
        out_ref[0] = (acc_ref[...] + bias_ref[0]).astype(out_ref.dtype)


# --------------------------------------------------------------------- tile selection
def _round_down(x, m):
    return (x // m) * m


def _choose_dim_tile(dim, desired, align=_LANE):
    """Tile for a NON-reduction dim.

    Full extent when dim <= desired; else the largest `align`-multiple divisor
    <= desired; else a fixed `desired` tile with a ragged cdiv edge (Pallas drops
    OOB output writes; OOB inputs only feed OOB outputs because K is never ragged).
    Never falls back to the full extent of a large dim (previous VMEM cliff).
    """
    if dim <= desired:
        return dim
    t = _round_down(min(desired, dim), align)
    while t >= align:
        if dim % t == 0:
            return t
        t -= align
    return desired


def _ws_bytes(rows, k, tn, xb, wb, ob):
    # Double-buffered x / W / out tiles (bias blocks are negligible).
    return 2 * (rows * k * xb + k * tn * wb + rows * tn * ob)


# ----------------------------------------------------------------------------- entry
def concat_linear_v2(context, x, w_t, b, w_hyper_t, adaptive_bias_scale, *,
                     tm_desired=256,            # M rows per tile (128 is enough on v5e)
                     tn_desired=512,            # out-col tile (~1024 v6e, 512 v7x, 256 v5e)
                     tk_desired=2048,           # K tile, only for the huge-dim_in fallback
                     vmem_budget_bytes=20 << 20,  # target double-buffered working set
                     vmem_limit_bytes=None):
    """Forward of ConcatLinear_v2.

    context            : (B, 1 + dim_c)
    x                  : (B, T, dim_in) or (B, dim_in)
    w_t                : (dim_in, dim_out)    main Linear weight, PRE-transposed
    b                  : (dim_out,)           main Linear bias
    w_hyper_t          : (1 + dim_c, dim_out) hyper-bias weight, PRE-transposed
    adaptive_bias_scale: scalar / shape-(1,) parameter
    """
    C = context.shape[-1]
    Bc = context.shape[0]
    dim_in = x.shape[-1]
    dim_out = w_t.shape[-1]
    out_dtype = x.dtype
    xb = jnp.dtype(x.dtype).itemsize
    wb = jnp.dtype(w_t.dtype).itemsize
    ob = jnp.dtype(out_dtype).itemsize

    # ---- 1) fused per-batch bias: ONE (B, C) x (C, dim_out) MXU matmul --------------
    scale = jnp.asarray(adaptive_bias_scale, jnp.float32).reshape(1)
    b2d = b.reshape(1, dim_out)
    bias = pl.pallas_call(
        _bias_kernel,
        out_shape=jax.ShapeDtypeStruct((Bc, dim_out), jnp.float32),
        grid_spec=pltpu.PrefetchScalarGridSpec(
            num_scalar_prefetch=0,
            grid=(1,),
            in_specs=[
                pl.BlockSpec(memory_space=pltpu.MemorySpace.SMEM),   # scale (scalar path)
                pl.BlockSpec((Bc, C), lambda i: (0, 0)),             # context
                pl.BlockSpec((C, dim_out), lambda i: (0, 0)),        # Wh^T
                pl.BlockSpec((1, dim_out), lambda i: (0, 0)),        # linear bias
            ],
            out_specs=pl.BlockSpec((Bc, dim_out), lambda i: (0, 0)),
        ),
        compiler_params=pltpu.CompilerParams(vmem_limit_bytes=48 << 20),
    )(scale, context, w_hyper_t, b2d)

    # common helpers -------------------------------------------------------------
    def _shrink_tn(tn, ws_fn):
        while ws_fn(tn) > vmem_budget_bytes and tn > _LANE:
            tn = max(_LANE, _round_down(tn // 2, _LANE))
        return tn

    def _params(sem, ws):
        lim = vmem_limit_bytes
        if lim is None:
            # explicit limit derived from the real tile working set; >= 32 MiB so
            # v5e's 16 MiB scoped default never bites, <= 48 MiB so v7x (64 MiB
            # physical) keeps headroom.
            lim = int(min(max(2 * ws, 32 << 20), 48 << 20))
        return pltpu.CompilerParams(dimension_semantics=sem, vmem_limit_bytes=lim)

    tn = _choose_dim_tile(dim_out, tn_desired)

    # ---- 2a) 2-D x: tile the batch dimension directly (no fake T=1 axis) ------------
    if x.ndim == 2:
        B = x.shape[0]
        tm = _choose_dim_tile(B, tm_desired, align=8)
        tn = _shrink_tn(tn, lambda t: _ws_bytes(tm, dim_in, t, xb, wb, ob))
        while _ws_bytes(tm, dim_in, tn, xb, wb, ob) > vmem_budget_bytes and tm > 8:
            tm = max(8, _round_down(tm // 2, 8))
        ws = _ws_bytes(tm, dim_in, tn, xb, wb, ob)
        grid = (pl.cdiv(dim_out, tn), pl.cdiv(B, tm))   # N outermost: W fetched nt times
        return pl.pallas_call(
            _mm_bias_2d_kernel,
            out_shape=jax.ShapeDtypeStruct((B, dim_out), out_dtype),
            grid_spec=pltpu.PrefetchScalarGridSpec(
                num_scalar_prefetch=0,
                grid=grid,
                in_specs=[
                    pl.BlockSpec((tm, dim_in), lambda n, m: (m, 0)),
                    pl.BlockSpec((dim_in, tn), lambda n, m: (0, n)),
                    pl.BlockSpec((tm, tn), lambda n, m: (m, n)),     # bias row-for-row
                ],
                out_specs=pl.BlockSpec((tm, tn), lambda n, m: (m, n)),
            ),
            compiler_params=_params(("parallel", "parallel"), ws),
        )(x, w_t, bias)

    # ---- 2b) 3-D x -------------------------------------------------------------------
    B, T, _ = x.shape
    bias3 = bias.reshape(B, 1, dim_out)

    if T < 128 and T % 8 == 0:
        # Small T: pack several batches into one M tile so the MXU sees tb*T rows.
        tb = max(1, min(B, tm_desired // T))
        ws_fn = lambda tb_, tn_: _ws_bytes(tb_ * T, dim_in, tn_, xb, wb, ob)
        tn = _shrink_tn(tn, lambda t: ws_fn(tb, t))
        while ws_fn(tb, tn) > vmem_budget_bytes and tb > 1:
            tb = max(1, tb // 2)
        ws = ws_fn(tb, tn)
        grid = (pl.cdiv(dim_out, tn), pl.cdiv(B, tb))
        return pl.pallas_call(
            _mm_bias_pack_kernel,
            out_shape=jax.ShapeDtypeStruct((B, T, dim_out), out_dtype),
            grid_spec=pltpu.PrefetchScalarGridSpec(
                num_scalar_prefetch=0,
                grid=grid,
                in_specs=[
                    pl.BlockSpec((tb, T, dim_in), lambda n, bi: (bi, 0, 0)),
                    pl.BlockSpec((dim_in, tn), lambda n, bi: (0, n)),
                    pl.BlockSpec((tb, 1, tn), lambda n, bi: (bi, 0, n)),
                ],
                out_specs=pl.BlockSpec((tb, T, tn), lambda n, bi: (bi, 0, n)),
            ),
            compiler_params=_params(("parallel", "parallel"), ws),
        )(x, w_t, bias3)

    # Large T (or awkward T not a multiple of 8): per-batch T tiling, full-K preferred.
    # TODO(synk): T < 128 with T % 8 != 0 still yields a short M tile here (correct,
    # MXU-underutilized); padding T to a multiple of 8 in the caller avoids it.
    tm = _choose_dim_tile(T, tm_desired, align=_LANE)
    tn_fk = _shrink_tn(tn, lambda t: _ws_bytes(tm, dim_in, t, xb, wb, ob))
    tm_fk = tm
    while _ws_bytes(tm_fk, dim_in, tn_fk, xb, wb, ob) > vmem_budget_bytes and tm_fk > 128:
        tm_fk = max(128, _round_down(tm_fk // 2, 128))
    full_k_ok = _ws_bytes(tm_fk, dim_in, tn_fk, xb, wb, ob) <= vmem_budget_bytes

    tk = 0
    if not full_k_ok:
        # Truly huge dim_in: look for a 128-aligned K divisor for the accumulating path.
        t = _round_down(min(tk_desired, dim_in), _LANE)
        while t >= _LANE:
            if dim_in % t == 0:
                tk = t
                break
            t -= _LANE

    if full_k_ok or tk == 0:
        # Full-K path: W streamed from HBM exactly once per N tile, no f32 acc RMW.
        tm, tn = tm_fk, tn_fk
        ws = _ws_bytes(tm, dim_in, tn, xb, wb, ob)
        grid = (pl.cdiv(dim_out, tn), B, pl.cdiv(T, tm))
        return pl.pallas_call(
            _mm_bias_seq_kernel,
            out_shape=jax.ShapeDtypeStruct((B, T, dim_out), out_dtype),
            grid_spec=pltpu.PrefetchScalarGridSpec(
                num_scalar_prefetch=0,
                grid=grid,
                in_specs=[
                    pl.BlockSpec((1, tm, dim_in), lambda n, bi, t: (bi, t, 0)),
                    pl.BlockSpec((dim_in, tn), lambda n, bi, t: (0, n)),
                    pl.BlockSpec((1, 1, tn), lambda n, bi, t: (bi, 0, n)),
                ],
                out_specs=pl.BlockSpec((1, tm, tn), lambda n, bi, t: (bi, t, n)),
            ),
            compiler_params=_params(("parallel", "parallel", "parallel"), ws),
        )(x, w_t, bias3)

    # K-tiled fallback: K innermost ("arbitrary") + f32 VMEM accumulator.
    tm_kt = _choose_dim_tile(T, tm_desired, align=_LANE)
    tn_kt = _choose_dim_tile(dim_out, tn_desired)
    while (_ws_bytes(tm_kt, tk, tn_kt, xb, wb, ob) + tm_kt * tn_kt * 4 > vmem_budget_bytes
           and tn_kt > _LANE):
        tn_kt = max(_LANE, _round_down(tn_kt // 2, _LANE))
    ws = _ws_bytes(tm_kt, tk, tn_kt, xb, wb, ob) + tm_kt * tn_kt * 4
    grid = (pl.cdiv(dim_out, tn_kt), B, pl.cdiv(T, tm_kt), dim_in // tk)
    return pl.pallas_call(
        _mm_bias_seq_kacc_kernel,
        out_shape=jax.ShapeDtypeStruct((B, T, dim_out), out_dtype),
        grid_spec=pltpu.PrefetchScalarGridSpec(
            num_scalar_prefetch=0,
            grid=grid,
            in_specs=[
                pl.BlockSpec((1, tm_kt, tk), lambda n, bi, t, k: (bi, t, k)),
                pl.BlockSpec((tk, tn_kt), lambda n, bi, t, k: (k, n)),
                pl.BlockSpec((1, 1, tn_kt), lambda n, bi, t, k: (bi, 0, n)),
            ],
            out_specs=pl.BlockSpec((1, tm_kt, tn_kt), lambda n, bi, t, k: (bi, t, n)),
            scratch_shapes=[pltpu.VMEM((tm_kt, tn_kt), jnp.float32)],
        ),
        compiler_params=_params(("parallel", "parallel", "parallel", "arbitrary"), ws),
    )(x, w_t, bias3)


# ------------------------------------------------------------------------ pure-JAX ref
def _reference(context, x, w, b, w_hyper, scale):
    # Mirrors the PyTorch forward (PyTorch-layout weights).
    ctx = context.astype(jnp.float32)
    mean = jnp.mean(ctx, axis=-1, keepdims=True)
    cen = ctx - mean
    var = jnp.mean(cen * cen, axis=-1, keepdims=True)
    ctx_ln = cen / jnp.sqrt(var + 1e-5)
    bias = ctx @ w_hyper.T + scale * (ctx_ln @ w_hyper.T)
    if x.ndim == 3:
        bias = bias[:, None, :]
    return x @ w.T + b + bias


if __name__ == "__main__":
    # Small shapes consistent with the module.
    B, T = 2, 8
    dim_in, dim_out, dim_c = 32, 32, 7
    C = 1 + dim_c

    key = jax.random.PRNGKey(0)
    k_ctx, k_x, k_w, k_b, k_wh, k_x3 = jax.random.split(key, 6)

    context = jax.random.normal(k_ctx, (B, C), dtype=jnp.float32)
    x = jax.random.normal(k_x, (B, T, dim_in), dtype=jnp.float32)

    # Deterministic PyTorch-Linear-style uniform init.
    bound_l = 1.0 / (dim_in ** 0.5)
    w = jax.random.uniform(k_w, (dim_out, dim_in), jnp.float32, -bound_l, bound_l)
    b = jax.random.uniform(k_b, (dim_out,), jnp.float32, -bound_l, bound_l)
    bound_h = 1.0 / (C ** 0.5)
    w_hyper = jax.random.uniform(k_wh, (dim_out, C), jnp.float32, -bound_h, bound_h)
    adaptive_bias_scale = jnp.ones((1,), jnp.float32)   # nn.Parameter(torch.ones(1))

    # Weights stored pre-transposed once (no per-call .T inside the wrapper).
    w_t = jnp.asarray(w).T              # (dim_in, dim_out)
    w_hyper_t = jnp.asarray(w_hyper).T  # (C, dim_out)

    fwd = jax.jit(concat_linear_v2)

    # 3-D x, small T -> batch-packed kernel (bias broadcast over seq).
    out = jax.block_until_ready(fwd(context, x, w_t, b, w_hyper_t, adaptive_bias_scale))
    ref = _reference(context, x, w, b, w_hyper, adaptive_bias_scale)
    assert out.shape == (B, T, dim_out)
    assert jnp.allclose(out, ref, atol=1e-5, rtol=1e-5)

    # 2-D x -> dedicated batch-tiled kernel (no fake T=1 axis).
    x2 = x[:, 0, :]
    out2 = jax.block_until_ready(fwd(context, x2, w_t, b, w_hyper_t, adaptive_bias_scale))
    ref2 = _reference(context, x2, w, b, w_hyper, adaptive_bias_scale)
    assert out2.shape == (B, dim_out)
    assert jnp.allclose(out2, ref2, atol=1e-5, rtol=1e-5)

    # 3-D x, larger T -> per-batch T-tiled full-K kernel.
    T3 = 256
    x3 = jax.random.normal(k_x3, (B, T3, dim_in), dtype=jnp.float32)
    out3 = jax.block_until_ready(fwd(context, x3, w_t, b, w_hyper_t, adaptive_bias_scale))
    ref3 = _reference(context, x3, w, b, w_hyper, adaptive_bias_scale)
    assert out3.shape == (B, T3, dim_out)
    assert jnp.allclose(out3, ref3, atol=1e-5, rtol=1e-5)

    print("KERNEL_OK")
</pallas_src>

<mosaic_0001>
module attributes {stable_mosaic.version = 11 : i64} {
  func.func @_mm_bias_pack_kernel(%arg0: i32, %arg1: i32, %arg2: memref<2x8x32xf32, #tpu.memory_space<vmem>>, %arg3: memref<32x32xf32, #tpu.memory_space<vmem>>, %arg4: memref<2x1x32xf32, #tpu.memory_space<vmem>>, %arg5: memref<2x8x32xf32, #tpu.memory_space<vmem>>) attributes {dimension_semantics = [#tpu.dimension_semantics<parallel>, #tpu.dimension_semantics<parallel>], iteration_bounds = array<i64: 1, 1>, scalar_prefetch = 0 : i64, scratch_operands = 0 : i64, tpu.core_type = #tpu.core_type<tc>, window_params = [{transform_indices = @transform_0, window_bounds = array<i64: 2, 8, 32>}, {transform_indices = @transform_1, window_bounds = array<i64: 32, 32>}, {transform_indices = @transform_2, window_bounds = array<i64: 2, 1, 32>}, {transform_indices = @transform_3, window_bounds = array<i64: 2, 8, 32>}]} {
    %c0 = arith.constant 0 : index
    %c0_0 = arith.constant 0 : index
    %c0_1 = arith.constant 0 : index
    %0 = vector.load %arg2[%c0, %c0_0, %c0_1] : memref<2x8x32xf32, #tpu.memory_space<vmem>>, vector<2x8x32xf32>
    %1 = vector.shape_cast %0 : vector<2x8x32xf32> to vector<16x32xf32>
    %c0_2 = arith.constant 0 : index
    %c0_3 = arith.constant 0 : index
    %2 = vector.load %arg3[%c0_2, %c0_3] : memref<32x32xf32, #tpu.memory_space<vmem>>, vector<32x32xf32>
    %cst = arith.constant dense<0.000000e+00> : vector<16x32xf32>
    %3 = tpu.matmul %1, %2, %cst {dimension_numbers = #tpu.dot_dimension_numbers<[1], [0], [0], [1], [0, 0, 1, 1], [], []>} : vector<16x32xf32>, vector<32x32xf32>, vector<16x32xf32> -> vector<16x32xf32>
    %4 = vector.shape_cast %3 : vector<16x32xf32> to vector<2x8x32xf32>
    %c0_4 = arith.constant 0 : index
    %c0_5 = arith.constant 0 : index
    %c0_6 = arith.constant 0 : index
    %5 = vector.load %arg4[%c0_4, %c0_5, %c0_6] : memref<2x1x32xf32, #tpu.memory_space<vmem>>, vector<2x1x32xf32>
    %6 = vector.broadcast %5 : vector<2x1x32xf32> to vector<2x8x32xf32>
    %7 = arith.addf %4, %6 : vector<2x8x32xf32>
    %c0_7 = arith.constant 0 : index
    %c0_8 = arith.constant 0 : index
    %c0_9 = arith.constant 0 : index
    %8 = vector.load %arg5[%c0_7, %c0_8, %c0_9] : memref<2x8x32xf32, #tpu.memory_space<vmem>>, vector<2x8x32xf32>
    tpu.vector_store %arg5[%c0_7, %c0_8, %c0_9], %7 {strides = array<i32>} : memref<2x8x32xf32, #tpu.memory_space<vmem>>, vector<2x8x32xf32>,
    return
  }
  func.func @transform_0(%arg0: i32, %arg1: i32) -> (i32, i32, i32) {
    %c0_i32 = arith.constant 0 : i32
    %c0_i32_0 = arith.constant 0 : i32
    %c0_i32_1 = arith.constant 0 : i32
    return %arg1, %c0_i32, %c0_i32_0 : i32, i32, i32
  }
  func.func @transform_1(%arg0: i32, %arg1: i32) -> (i32, i32) {
    %c0_i32 = arith.constant 0 : i32
    %c0_i32_0 = arith.constant 0 : i32
    return %c0_i32, %arg0 : i32, i32
  }
  func.func @transform_2(%arg0: i32, %arg1: i32) -> (i32, i32, i32) {
    %c0_i32 = arith.constant 0 : i32
    %c0_i32_0 = arith.constant 0 : i32
    return %arg1, %c0_i32, %arg0 : i32, i32, i32
  }
  func.func @transform_3(%arg0: i32, %arg1: i32) -> (i32, i32, i32) {
    %c0_i32 = arith.constant 0 : i32
    %c0_i32_0 = arith.constant 0 : i32
    return %arg1, %c0_i32, %arg0 : i32, i32, i32
  }
}

module attributes {stable_mosaic.version = 11 : i64} {
  func.func @_bias_kernel(%arg0: i32, %arg1: memref<1xf32, #tpu.memory_space<smem>>, %arg2: memref<2x8xf32, #tpu.memory_space<vmem>>, %arg3: memref<8x32xf32, #tpu.memory_space<vmem>>, %arg4: memref<1x32xf32, #tpu.memory_space<vmem>>, %arg5: memref<2x32xf32, #tpu.memory_space<vmem>>) attributes {dimension_semantics = [#tpu.dimension_semantics<arbitrary>], iteration_bounds = array<i64: 1>, scalar_prefetch = 0 : i64, scratch_operands = 0 : i64, tpu.core_type = #tpu.core_type<tc>, window_params = [{transform_indices = @transform_0, window_bounds = array<i64: 1>}, {pipeline_mode = #tpu.pipeline_mode<synchronous>, transform_indices = @transform_1, window_bounds = array<i64: 2, 8>}, {pipeline_mode = #tpu.pipeline_mode<synchronous>, transform_indices = @transform_2, window_bounds = array<i64: 8, 32>}, {pipeline_mode = #tpu.pipeline_mode<synchronous>, transform_indices = @transform_3, window_bounds = array<i64: 1, 32>}, {pipeline_mode = #tpu.pipeline_mode<synchronous>, transform_indices = @transform_4, window_bounds = array<i64: 2, 32>}]} {
    %c0 = arith.constant 0 : index
    %c0_0 = arith.constant 0 : index
    %0 = vector.load %arg2[%c0, %c0_0] : memref<2x8xf32, #tpu.memory_space<vmem>>, vector<2x8xf32>
    %cst = arith.constant dense<0.000000e+00> : vector<2xf32>
    %1 = vector.multi_reduction <add>, %0, %cst [1] : vector<2x8xf32> to vector<2xf32>
    %2 = vector.shape_cast %1 : vector<2xf32> to vector<2x1xf32>
    %cst_1 = arith.constant 8.000000e+00 : f32
    %3 = vector.broadcast %cst_1 : f32 to vector<2x1xf32>
    %4 = arith.divf %2, %3 : vector<2x1xf32>
    %5 = vector.broadcast %4 : vector<2x1xf32> to vector<2x8xf32>
    %6 = arith.subf %0, %5 : vector<2x8xf32>
    %7 = arith.mulf %6, %6 : vector<2x8xf32>
    %cst_2 = arith.constant dense<0.000000e+00> : vector<2xf32>
    %8 = vector.multi_reduction <add>, %7, %cst_2 [1] : vector<2x8xf32> to vector<2xf32>
    %9 = vector.shape_cast %8 : vector<2xf32> to vector<2x1xf32>
    %cst_3 = arith.constant 8.000000e+00 : f32
    %10 = vector.broadcast %cst_3 : f32 to vector<2x1xf32>
    %11 = arith.divf %9, %10 : vector<2x1xf32>
    %cst_4 = arith.constant 9.99999974E-6 : f32
    %12 = vector.broadcast %cst_4 : f32 to vector<2x1xf32>
    %13 = arith.addf %11, %12 : vector<2x1xf32>
    %14 = math.rsqrt %13 : vector<2x1xf32>
    %15 = vector.broadcast %14 : vector<2x1xf32> to vector<2x8xf32>
    %16 = arith.mulf %6, %15 : vector<2x8xf32>
    %c0_5 = arith.constant 0 : index
    %17 = memref.load %arg1[%c0_5] : memref<1xf32, #tpu.memory_space<smem>>
    %18 = vector.broadcast %17 : f32 to vector<2x8xf32>
    %19 = arith.mulf %18, %16 : vector<2x8xf32>
    %20 = arith.addf %0, %19 : vector<2x8xf32>
    %c0_6 = arith.constant 0 : index
    %c0_7 = arith.constant 0 : index
    %21 = vector.load %arg3[%c0_6, %c0_7] : memref<8x32xf32, #tpu.memory_space<vmem>>, vector<8x32xf32>
    %cst_8 = arith.constant dense<0.000000e+00> : vector<2x32xf32>
    %22 = tpu.matmul %20, %21, %cst_8 {dimension_numbers = #tpu.dot_dimension_numbers<[1], [0], [0], [1], [0, 0, 1, 1], [], []>} : vector<2x8xf32>, vector<8x32xf32>, vector<2x32xf32> -> vector<2x32xf32>
    %c0_9 = arith.constant 0 : index
    %c0_10 = arith.constant 0 : index
    %23 = vector.load %arg4[%c0_9, %c0_10] : memref<1x32xf32, #tpu.memory_space<vmem>>, vector<1x32xf32>
    %24 = vector.broadcast %23 : vector<1x32xf32> to vector<2x32xf32>
    %25 = arith.addf %22, %24 : vector<2x32xf32>
    %c0_11 = arith.constant 0 : index
    %c0_12 = arith.constant 0 : index
    %26 = vector.load %arg5[%c0_11, %c0_12] : memref<2x32xf32, #tpu.memory_space<vmem>>, vector<2x32xf32>
    tpu.vector_store %arg5[%c0_11, %c0_12], %25 {strides = array<i32>} : memref<2x32xf32, #tpu.memory_space<vmem>>, vector<2x32xf32>,
    return
  }
  func.func @transform_0(%arg0: i32) -> i32 {
    %c0_i32 = arith.constant 0 : i32
    %c0_i32_0 = arith.constant 0 : i32
    return %c0_i32 : i32
  }
  func.func @transform_1(%arg0: i32) -> (i32, i32) {
    %c0_i32 = arith.constant 0 : i32
    %c0_i32_0 = arith.constant 0 : i32
    %c0_i32_1 = arith.constant 0 : i32
    return %c0_i32, %c0_i32_0 : i32, i32
  }
  func.func @transform_2(%arg0: i32) -> (i32, i32) {
    %c0_i32 = arith.constant 0 : i32
    %c0_i32_0 = arith.constant 0 : i32
    %c0_i32_1 = arith.constant 0 : i32
    return %c0_i32, %c0_i32_0 : i32, i32
  }
  func.func @transform_3(%arg0: i32) -> (i32, i32) {
    %c0_i32 = arith.constant 0 : i32
    %c0_i32_0 = arith.constant 0 : i32
    %c0_i32_1 = arith.constant 0 : i32
    return %c0_i32, %c0_i32_0 : i32, i32
  }
  func.func @transform_4(%arg0: i32) -> (i32, i32) {
    %c0_i32 = arith.constant 0 : i32
    %c0_i32_0 = arith.constant 0 : i32
    %c0_i32_1 = arith.constant 0 : i32
    return %c0_i32, %c0_i32_0 : i32, i32
  }
}

</mosaic_0001>

<bundles_post_ra>
// kernel: concat_linear_v2.3
= control target key start
LH: loop header
LB: loop body
LE: loop exit
PB: predicated region body
PF: predicated region fallthrough
CT: control target
= control target key end

     0   :  { %8 = vsyncpa [#allocation3], 0  ;;  %s309_s0 = inlined_call_operand.hbm [shape: f32[2,8,32], index: 0, kind: input, shape index: {}]   ;;  %s310_s1 = inlined_call_operand.vmem [shape: f32[32,32], index: 1, kind: input, shape index: {}]   ;;  %s311_s2 = inlined_call_operand.vmem [shape: f32[2,1,32], index: 2, kind: input, shape index: {}]   ;;  %s312_s3 = inlined_call_operand.hbm [shape: f32[2,8,32], index: 3, kind: output, shape index: {}]  }
   0x1   :  { %9 = vsyncpa [#allocation4], 0  ;;  %s233_s12 = smov [#allocation2]   ;;  %s185_s16 = scalar_lea.hbm %s309_s0, 256 }
   0x2   :  { %s15_s13 = sshll.u32 %s233_s12, 4  ;;  %p186_p0 = scmp.ne.s32.totalorder %s309_s0, %s185_s16  ;;  %s16_s13 = int_to_ptr.vmem [resolvable:$true] %s15_s13 }
   0x3   :  { %p189_p1 = scmp.lt.u32.totalorder %s185_s16, %s309_s0 }
   0x5   :  { %p191_p2 = pnand %p189_p1, %p186_p0 }
   0x7   :  { %194 = shalt.err (!%p191_p2)
}
   0x8   :  { %s195_s21 = scalar_lea.vmem %s16_s13, 256  ;;  %p200_p4 = scmp.lt.s32.totalorder %s16_s13, %s16_s13 }
   0x9   :  { %p196_p3 = scmp.ne.s32.totalorder %s16_s13, %s195_s21  ;;  %p201_p5 = scmp.lt.s32.totalorder %s195_s21, %s195_s21 }
   0xb   :  { %p202_p6 = por %p201_p5, %p200_p4 }
   0xd   :  { %p203_p7 = pnand %p202_p6, %p196_p3 }
   0xf   :  { %206 = shalt.err (!%p203_p7)
}
  0x10   :  { %s234_s22 = smov 128   ;;  %s235_s23 = smov 8  }
  0x11   :  { %21 = dma.hbm_to_vmem [thread:$0]  %s309_s0, 256, %s16_s13, [#allocation3], %s234_s22, %s234_s22, %s235_s23  }
  0x12   :  { %229 = dma.done.wait [#allocation3], 256  }
  0x13   :  { %230 = vsyncadd [#allocation3], 4294967040  ;;  %vm35_vm0 = vcmask 261120   ;;  %v31_v0 = vld [vmem:[%s310_s1] sm:$0xff]  ;;  %v32_v1 = vld [vmem:[%s310_s1 + $0x8] sm:$0xff] }
  0x14   :  { %v33_v2 = vld [vmem:[%s310_s1 + $0x10] sm:$0xff]  ;;  %v173_v3 = vpack.c.bf16 %v32_v1, %v31_v0  ;;  %v34_v4 = vld [vmem:[%s310_s1 + $0x18] sm:$0xff]  ;;  %v29_v5 = vld [vmem:[#allocation2] sm:$0xff]  ;;  %s236_s1 = smov [#allocation5]  }
  0x15   :  { %v177_v6 = vpack.c.bf16 %v34_v4, %v33_v2  ;;  %170 = vmatprep.mubr.msk.f32.mxu0 %vm35_vm0, %v29_v5  ;;  %v30_v7 = vld [vmem:[#allocation2 + $0x8] sm:$0xff]  ;;  %v155_v8 = vld [vmem:[%s311_s2 + $0x1] ss:$0 sm:$0xff]  ;;  %v154_v9 = vld [vmem:[%s311_s2] ss:$0 sm:$0xff]  ;;  %s140_s10 = sshll.u32 %s236_s1, 4  ;;  %s141_s10 = int_to_ptr.vmem [resolvable:$true] %s140_s10 }
  0x16   :  { %174 = vmatprep.subr.bf16.mxu0 %v173_v3  ;;  %s207_s11 = scalar_lea.vmem %s141_s10, 256  ;;  %p212_p9 = scmp.lt.s32.totalorder %s141_s10, %s141_s10 }
  0x17   :  { %176 = vmatpush3.bf16.msra.mxu0 %v173_v3  ;;  %p208_p8 = scmp.ne.s32.totalorder %s141_s10, %s207_s11  ;;  %p213_p10 = scmp.lt.s32.totalorder %s207_s11, %s207_s11 }
  0x18   :  { %178 = vmatprep.subr.bf16.mxu0 %v177_v6 }
  0x19   :  { %p214_p11 = por %p213_p10, %p212_p9 }
  0x1b   :  { %180 = vmatpush3.bf16.msra.mxu0 %v177_v6  ;;  %p215_p12 = pnand %p214_p11, %p208_p8 }
  0x1e   :  { %171 = vmatmul.mubr.msk.f32.vlgmr.msra.gmra.mrb[0].mxu0 %vm35_vm0, %v30_v7 }
  0xf1   :  { %v172_v10 = vpop.f32.mrb[0].mxu0 }
  0xf2   :  { %v132_v11 = vadd.f32 %v172_v10, %v155_v8  ;;  %v108_v12 = vpop.f32.mrb[1].mxu0 }
  0xf3   :  { %v131_v13 = vadd.f32 %v154_v9, %v108_v12 }
  0xf4   :  { %134 = vst.msk [vmem:[#allocation5 + $0x8] sm:$0xff] %vm35_vm0, %v132_v11 }
  0xf5   :  { %133 = vst.msk [vmem:[#allocation5] sm:$0xff] %vm35_vm0, %v131_v13 }
  0xf6   :  { %218 = shalt.err (!%p215_p12)
}
  0xf7   :  { %s219_s13 = scalar_lea.hbm %s312_s3, 256 }
  0xf8   :  { %p220_p13 = scmp.ne.s32.totalorder %s312_s3, %s219_s13  ;;  %p223_p0 = scmp.lt.u32.totalorder %s219_s13, %s312_s3 }
  0xfa   :  { %p225_p1 = pnand %p223_p0, %p220_p13 }
  0xfc   :  { %228 = shalt.err (!%p225_p1)
}
  0xfd   :  { %146 = dma.vmem_to_hbm [thread:$0]  %s141_s10, 256, %s312_s3, [#allocation4], %s234_s22, %s234_s22, %s235_s23  }
  0xfe   :  { %231 = dma.done.wait [#allocation4], 256  }
  0xff   :  { %232 = vsyncadd [#allocation4], 4294967040 }
 0x100   :  { %150 = vsyncpa [#allocation3], 1 }
 0x101   :  { %151 = vsyncpa [#allocation4], 1 }

// kernel: concat_linear_v2.2
= control target key start
LH: loop header
LB: loop body
LE: loop exit
PB: predicated region body
PF: predicated region fallthrough
CT: control target
= control target key end

     0   :  { %10 = vsyncpa [#allocation4], 0  ;;  %s277_s0 = inlined_call_operand.<no memory space> [shape: f32[1], index: 0, kind: input, shape index: {}]   ;;  %s278_s1 = inlined_call_operand.hbm [shape: f32[2,8], index: 1, kind: input, shape index: {}]   ;;  %s279_s2 = inlined_call_operand.vmem [shape: f32[8,32], index: 2, kind: input, shape index: {}]   ;;  %s280_s3 = inlined_call_operand.hbm [shape: f32[1,32], index: 3, kind: input, shape index: {}]   ;;  %s281_s4 = inlined_call_operand.vmem [shape: f32[2,32], index: 4, kind: output, shape index: {}]  }
   0x1   :  { %11 = vsyncpa [#allocation6], 0  ;;  %s215_s15 = smov [#allocation3]   ;;  %s216_s17 = smov [#allocation5]  }
   0x2   :  { %s20_s16 = sshll.u32 %s215_s15, 4  ;;  %s32_s18 = sshll.u32 %s216_s17, 4  ;;  %s21_s16 = int_to_ptr.vmem [resolvable:$true] %s20_s16  ;;  %s33_s18 = int_to_ptr.vmem [resolvable:$true] %s32_s18 }
   0x3   :  { %s167_s21 = scalar_lea.hbm %s278_s1, 32 }
   0x4   :  { %p168_p0 = scmp.ne.s32.totalorder %s278_s1, %s167_s21  ;;  %p171_p1 = scmp.lt.u32.totalorder %s167_s21, %s278_s1 }
   0x6   :  { %p173_p2 = pnand %p171_p1, %p168_p0 }
   0x8   :  { %176 = shalt.err (!%p173_p2)
}
   0x9   :  { %s177_s26 = scalar_lea.vmem %s21_s16, 32  ;;  %p182_p4 = scmp.lt.s32.totalorder %s21_s16, %s21_s16 }
   0xa   :  { %p178_p3 = scmp.ne.s32.totalorder %s21_s16, %s177_s26  ;;  %p183_p5 = scmp.lt.s32.totalorder %s177_s26, %s177_s26 }
   0xc   :  { %p184_p6 = por %p183_p5, %p182_p4 }
   0xe   :  { %p185_p7 = pnand %p184_p6, %p178_p3 }
  0x10   :  { %188 = shalt.err (!%p185_p7)
}
  0x11   :  { %23 = dma.hbm_to_vmem [thread:$0]  %s278_s1, 32, %s21_s16, [#allocation4]  }
  0x12   :  { %s189_s5 = scalar_lea.hbm %s280_s3, 16 }
  0x13   :  { %p190_p8 = scmp.ne.s32.totalorder %s280_s3, %s189_s5  ;;  %p193_p9 = scmp.lt.u32.totalorder %s189_s5, %s280_s3 }
  0x15   :  { %p195_p10 = pnand %p193_p9, %p190_p8 }
  0x17   :  { %198 = shalt.err (!%p195_p10)
}
  0x18   :  { %s199_s10 = scalar_lea.vmem %s33_s18, 16  ;;  %s203_s11 = scalar_lea.vmem %s33_s18, 32 }
  0x19   :  { %p200_p11 = scmp.ne.s32.totalorder %s33_s18, %s199_s10  ;;  %p204_p12 = scmp.lt.s32.totalorder %s33_s18, %s33_s18 }
  0x1a   :  { %p205_p13 = scmp.lt.s32.totalorder %s203_s11, %s199_s10 }
  0x1c   :  { %p206_p0 = por %p205_p13, %p204_p12 }
  0x1e   :  { %p207_p1 = pnand %p206_p0, %p200_p11 }
  0x20   :  { %210 = shalt.err (!%p207_p1)
}
  0x21   :  { %35 = dma.hbm_to_vmem [thread:$0]  %s280_s3, 16, %s33_s18, [#allocation6]  }
  0x22   :  { %211 = dma.done.wait [#allocation4], 32  }
  0x23   :  { %212 = vsyncadd [#allocation4], 4294967264 }
  0x24   :  { %213 = dma.done.wait [#allocation6], 16  }
  0x25   :  { %214 = vsyncadd [#allocation6], 4294967280  ;;  %vm43_vm0 = vcmask 58368   ;;  %v42_v0 = vld [vmem:[#allocation3] sm:$0x3]  ;;  %v217_v8 = vmov 0.0   ;;  %v59_v13 = vstv %s277_s0 }
  0x26   :  { %v44_v1 = vsel %vm43_vm0, %v42_v0, 0.0  ;;  %v62_v7 = vld [vmem:[%s279_s2] sm:$0xff]  ;;  %156 = vmatprep.subr.mxu0 %v217_v8  ;;  %vm218_vm1 = vmmov 0   ;;  %vm70_vm2 = vcmask 64512   ;;  %vm144_vm3 = vcmask 254976  }
  0x27   :  { %45 = vadd.xlane.f32.xlu0 %v44_v1  ;;  %158 = vmatprep.mubr.msk.f32.mxu0 %vm218_vm1, %v217_v8  ;;  %v152_v17 = vld [vmem:[#allocation5] ss:$0 sm:$0xff] }
  0x28   :  { %157 = vmatpush3.msra.mxu0 %v62_v7 }
  0xb4   :  { %v46_v2 = vpop.xlane.xlu0 %45 }
  0xb5   :  { %v48_v3 = vmul.f32 0.125, %v46_v2 }
  0xb7   :  { %v49_v4 = vsub.f32 %v42_v0, %v48_v3 }
  0xb9   :  { %v50_v5 = vmul.f32 %v49_v4, %v49_v4 }
  0xbb   :  { %v51_v6 = vsel %vm43_vm0, %v50_v5, 0.0 }
  0xbc   :  { %52 = vadd.xlane.f32.xlu0 %v51_v6 }
 0x149   :  { %v53_v9 = vpop.xlane.xlu0 %52 }
 0x14a   :  { %v54_v10 = vmul.f32 0.125, %v53_v9 }
 0x14c   :  { %v55_v11 = vadd.f32 1e-05, %v54_v10 }
 0x14e   :  { %165 = vrsqrt.f32 %v55_v11 }
 0x158   :  { %v166_v12 = vpop.eup %165 }
 0x159   :  { %v57_v14 = vmul.f32 %v166_v12, %v49_v4 }
 0x15b   :  { %v60_v15 = vmul.f32 %v59_v13, %v57_v14 }
 0x15d   :  { %v61_v16 = vadd.f32 %v60_v15, %v42_v0 }
 0x15f   :  { %159 = vmatmul.mubr.msk.f32.vlgmr.msra.gmra.mrb[0].mxu0 %vm70_vm2, %v61_v16 }
 0x232   :  { %v140_v18 = vpop.f32.mrb[0].mxu0 }
 0x233   :  { %v141_v19 = vadd.f32 %v152_v17, %v140_v18  ;;  %v160_v20 = vpop.f32.mrb[1].mxu0 }
 0x235   :  { %145 = vst.msk [vmem:[%s281_s4] sm:$0x3] %vm144_vm3, %v141_v19 }
 0x236   :  { %150 = vsyncpa [#allocation4], 1 }
 0x237   :  { %151 = vsyncpa [#allocation6], 1 }

</bundles_post_ra>
